<compile_context>
chip_gen: v5e
topology: v5e:2x2
jax: 0.10.0
libtpu: 0.0.40
codegen_flags: <defaults>
</compile_context>

<pallas_src>
import functools

import jax
import jax.numpy as jnp
from jax.experimental import pallas as pl
from jax.experimental.pallas import tpu as pltpu

LEAK = 0.2
BN_EPS = 1e-5
_LANE = 128
_VMEM_LIMIT = 64 * 1024 * 1024      # respects v7x's 64 MiB physical VMEM
_TILE_BUDGET = 40 * 1024 * 1024     # double-buffered per-step footprint budget


def _round_up(x, m):
    return (x + m - 1) // m * m


def _leaky(y):
    return jnp.where(y > 0, y, LEAK * y)


# ------------------------------ Pallas kernels ------------------------------

def _conv_leaky_kernel(a_ref, w_ref, o_ref):
    # a: (tm, K) bf16, w: (K, Cpad) bf16 resident  ->  o: (tm, Cpad) bf16
    y = jnp.dot(a_ref[...], w_ref[...], preferred_element_type=jnp.float32)
    o_ref[...] = _leaky(y).astype(o_ref.dtype)


def _conv_stats_kernel(a_ref, w_ref, y_ref, sum_ref, ssq_ref):
    # conv matmul tile + per-channel sum / sum-of-squares accumulated across
    # row tiles (resident (1, Cpad) accumulator outputs, init on first step).
    @pl.when(pl.program_id(0) == 0)
    def _():
        sum_ref[...] = jnp.zeros_like(sum_ref)
        ssq_ref[...] = jnp.zeros_like(ssq_ref)

    y = jnp.dot(a_ref[...], w_ref[...], preferred_element_type=jnp.float32)
    y_ref[...] = y
    sum_ref[...] += jnp.sum(y, axis=0, keepdims=True)
    ssq_ref[...] += jnp.sum(y * y, axis=0, keepdims=True)


def _bn_leaky_kernel(y_ref, s_ref, b_ref, o_ref):
    # y: (tm, Cpad) f32; s/b: (1, Cpad) folded BN scale/shift; o: bf16
    yn = y_ref[...] * s_ref[...] + b_ref[...]
    o_ref[...] = _leaky(yn).astype(o_ref.dtype)


def _final_mean_kernel(a_ref, w_ref, o_ref, *, inv_n):
    # Final (4,16) conv collapses spatial dims; Cout == 1, so skip the MXU and
    # do a VPU multiply + full reduction fused with the batch mean; the scalar
    # result goes to SMEM.
    prod = a_ref[...].astype(jnp.float32) * w_ref[...].astype(jnp.float32)
    o_ref[0, 0] = jnp.sum(prod) * inv_n


# ------------------------------ launch helpers ------------------------------

def _pick_tm(rows, k, cpad, y_bytes):
    tm = min(512, _round_up(rows, 16))
    while tm > 16:
        fp = 2 * tm * k * 2 + 2 * tm * cpad * y_bytes + 2 * k * cpad * 2
        if fp <= _TILE_BUDGET:
            break
        tm = max(16, _round_up(tm // 2, 16))
    return tm


def _conv_matmul_leaky(cols, wmat, cout):
    rows, k = cols.shape
    cpad = _round_up(cout, _LANE)
    wpad = jnp.pad(wmat, ((0, 0), (0, cpad - cout))).astype(jnp.bfloat16)
    tm = _pick_tm(rows, k, cpad, 2)
    prows = _round_up(rows, tm)
    a = jnp.pad(cols, ((0, prows - rows), (0, 0)))
    out = pl.pallas_call(
        _conv_leaky_kernel,
        out_shape=jax.ShapeDtypeStruct((prows, cpad), jnp.bfloat16),
        grid=(prows // tm,),
        in_specs=[pl.BlockSpec((tm, k), lambda i: (i, 0)),
                  pl.BlockSpec((k, cpad), lambda i: (0, 0))],
        out_specs=pl.BlockSpec((tm, cpad), lambda i: (i, 0)),
        compiler_params=pltpu.CompilerParams(
            dimension_semantics=("parallel",),
            vmem_limit_bytes=_VMEM_LIMIT),
        cost_estimate=pl.CostEstimate(
            flops=2 * prows * k * cpad, transcendentals=0,
            bytes_accessed=prows * k * 2 + k * cpad * 2 + prows * cpad * 2),
    )(a, wpad)
    return out[:rows, :cout]


def _conv_matmul_bn_leaky(cols, wmat, gamma, beta, cout):
    rows, k = cols.shape
    cpad = _round_up(cout, _LANE)
    wpad = jnp.pad(wmat, ((0, 0), (0, cpad - cout))).astype(jnp.bfloat16)
    tm = _pick_tm(rows, k, cpad, 4)
    prows = _round_up(rows, tm)
    a = jnp.pad(cols, ((0, prows - rows), (0, 0)))
    grid = (prows // tm,)

    # pass 1: conv matmul + cross-tile sum / sum-of-squares accumulation
    y, ysum, yssq = pl.pallas_call(
        _conv_stats_kernel,
        out_shape=(jax.ShapeDtypeStruct((prows, cpad), jnp.float32),
                   jax.ShapeDtypeStruct((1, cpad), jnp.float32),
                   jax.ShapeDtypeStruct((1, cpad), jnp.float32)),
        grid=grid,
        in_specs=[pl.BlockSpec((tm, k), lambda i: (i, 0)),
                  pl.BlockSpec((k, cpad), lambda i: (0, 0))],
        out_specs=(pl.BlockSpec((tm, cpad), lambda i: (i, 0)),
                   pl.BlockSpec((1, cpad), lambda i: (0, 0)),
                   pl.BlockSpec((1, cpad), lambda i: (0, 0))),
        compiler_params=pltpu.CompilerParams(
            dimension_semantics=("arbitrary",),   # resident stats accumulators
            vmem_limit_bytes=_VMEM_LIMIT),
        cost_estimate=pl.CostEstimate(
            flops=2 * prows * k * cpad, transcendentals=0,
            bytes_accessed=prows * k * 2 + k * cpad * 2 + prows * cpad * 4),
    )(a, wpad)

    # tiny (1, Cpad) wrapper math: training-mode batch stats (biased var),
    # folded into one affine scale/shift.  Zero-padded rows contribute nothing,
    # so divide by the true row count.
    mean = ysum / rows
    var = yssq / rows - mean * mean
    inv = jax.lax.rsqrt(var + BN_EPS)
    gpad = jnp.pad(gamma, ((0, 0), (0, cpad - cout)), constant_values=1.0)
    bpad = jnp.pad(beta, ((0, 0), (0, cpad - cout)))
    scale = gpad * inv
    shift = bpad - mean * scale

    # pass 2: normalize + LeakyReLU, gridded / parallel
    out = pl.pallas_call(
        _bn_leaky_kernel,
        out_shape=jax.ShapeDtypeStruct((prows, cpad), jnp.bfloat16),
        grid=grid,
        in_specs=[pl.BlockSpec((tm, cpad), lambda i: (i, 0)),
                  pl.BlockSpec((1, cpad), lambda i: (0, 0)),
                  pl.BlockSpec((1, cpad), lambda i: (0, 0))],
        out_specs=pl.BlockSpec((tm, cpad), lambda i: (i, 0)),
        compiler_params=pltpu.CompilerParams(
            dimension_semantics=("parallel",),
            vmem_limit_bytes=_VMEM_LIMIT),
        cost_estimate=pl.CostEstimate(
            flops=4 * prows * cpad, transcendentals=0,
            bytes_accessed=prows * cpad * 4 + prows * cpad * 2 + 2 * cpad * 4),
    )(y, scale, shift)
    return out[:rows, :cout]


# ------------------------------ JAX glue ------------------------------------

def _im2col_nhwc(x, kh, kw, stride, pad):
    # x: (N, H, W, C) -> rows (N*OH*OW, KH*KW*C), spatial-major patch order
    # (matches weight reshaped as (KH, KW, Cin, Cout)).
    n, h, w, c = x.shape
    xp = jnp.pad(x, ((0, 0), (pad, pad), (pad, pad), (0, 0)))
    oh = (h + 2 * pad - kh) // stride + 1
    ow = (w + 2 * pad - kw) // stride + 1
    taps = []
    for i in range(kh):
        for j in range(kw):
            taps.append(xp[:, i:i + stride * (oh - 1) + 1:stride,
                           j:j + stride * (ow - 1) + 1:stride, :])
    cols = jnp.stack(taps, axis=3)                    # (N, OH, OW, KH*KW, C)
    cols = cols.reshape(n * oh * ow, kh * kw * c)
    return cols, oh, ow


def init_dcgan_d_params(key, isize, nz, nc, ndf, n_extra_layers=0):
    """Mirror DCGAN_D.__init__ layer construction (nz unused by D, kept for parity)."""
    assert min(isize) % 16 == 0, "isize has to be a multiple of 16"
    keys = iter(jax.random.split(key, 64))

    def conv_w(cout, cin, kh, kw):
        return (jax.random.normal(next(keys), (cout, cin, kh, kw), jnp.float32)
                * jnp.float32(0.02))

    layers = []
    # initial: Conv2d(nc, ndf, 4, 2, 1) + LeakyReLU(0.2)
    layers.append(dict(kind="conv_leaky", w=conv_w(ndf, nc, 4, 4), stride=2, pad=1))
    csize, cndf = min(isize) // 2, ndf
    # extra layers: Conv2d(cndf, cndf, 3, 1, 1) + BN + LeakyReLU
    for _ in range(n_extra_layers):
        layers.append(dict(kind="conv_bn_leaky", w=conv_w(cndf, cndf, 3, 3),
                           gamma=jnp.ones((1, cndf), jnp.float32),
                           beta=jnp.zeros((1, cndf), jnp.float32),
                           stride=1, pad=1))
    # pyramid: Conv2d(cndf, 2*cndf, 4, 2, 1) + BN + LeakyReLU
    while csize > 4:
        layers.append(dict(kind="conv_bn_leaky", w=conv_w(cndf * 2, cndf, 4, 4),
                           gamma=jnp.ones((1, cndf * 2), jnp.float32),
                           beta=jnp.zeros((1, cndf * 2), jnp.float32),
                           stride=2, pad=1))
        cndf, csize = cndf * 2, csize // 2
    # final: Conv2d(cndf, 1, (4, 16), 1, 0)
    layers.append(dict(kind="final", w=conv_w(1, cndf, 4, 16), stride=1, pad=0))
    return layers


def dcgan_d_forward(params, x):
    """x: (N, nc, H, W) NCHW float32 -> (1,) float32 (output.mean(0).view(1))."""
    n = x.shape[0]
    # One layout change at the boundary: NCHW -> NHWC, bf16 activations.
    x = x.transpose(0, 2, 3, 1).astype(jnp.bfloat16)
    for layer in params:
        w = layer["w"]
        cout, cin, kh, kw = w.shape
        cols, oh, ow = _im2col_nhwc(x, kh, kw, layer["stride"], layer["pad"])
        # spatial-major weight matrix (KH*KW*Cin, Cout) matching im2col order
        wmat = w.transpose(2, 3, 1, 0).reshape(kh * kw * cin, cout)
        if layer["kind"] == "conv_leaky":
            y = _conv_matmul_leaky(cols, wmat, cout)
        elif layer["kind"] == "conv_bn_leaky":
            y = _conv_matmul_bn_leaky(cols, wmat, layer["gamma"], layer["beta"], cout)
        else:  # final conv + batch mean
            assert oh == 1 and ow == 1, "final (4,16) conv must collapse spatial dims"
            wrow = wmat.reshape(1, -1).astype(jnp.bfloat16)
            out = pl.pallas_call(
                functools.partial(_final_mean_kernel, inv_n=1.0 / n),
                out_shape=jax.ShapeDtypeStruct((1, 1), jnp.float32),
                in_specs=[pl.BlockSpec(memory_space=pltpu.MemorySpace.VMEM),
                          pl.BlockSpec(memory_space=pltpu.MemorySpace.VMEM)],
                out_specs=pl.BlockSpec(memory_space=pltpu.MemorySpace.SMEM),
            )(cols, wrow)
            return out.reshape(1)                      # .view(1)
        x = y.reshape(n, oh, ow, cout)                 # stays NHWC (no transpose)
    raise AssertionError("final layer missing")


# ------------------------------ pure-JAX reference ---------------------------

def reference_forward(params, x):
    # Same math, with bf16 rounding of conv inputs to match the bf16 MXU path.
    def q(a):
        return a.astype(jnp.bfloat16).astype(jnp.float32)

    x = q(x)
    for layer in params:
        w = q(layer["w"])
        s, p = layer["stride"], layer["pad"]
        y = jax.lax.conv_general_dilated(
            x, w, (s, s), [(p, p), (p, p)],
            dimension_numbers=("NCHW", "OIHW", "NCHW"),
            precision=jax.lax.Precision.HIGHEST)
        if layer["kind"] == "conv_leaky":
            x = q(jnp.where(y > 0, y, LEAK * y))
        elif layer["kind"] == "conv_bn_leaky":
            mean = jnp.mean(y, axis=(0, 2, 3), keepdims=True)
            var = jnp.mean((y - mean) ** 2, axis=(0, 2, 3), keepdims=True)
            yn = (y - mean) * jax.lax.rsqrt(var + BN_EPS)
            yn = (yn * layer["gamma"].reshape(1, -1, 1, 1)
                  + layer["beta"].reshape(1, -1, 1, 1))
            x = q(jnp.where(yn > 0, yn, LEAK * yn))
        else:
            return jnp.mean(y, axis=0).reshape(1)
    raise AssertionError("final layer missing")


# ------------------------------ main -----------------------------------------

if __name__ == "__main__":
    key = jax.random.PRNGKey(0)
    kp, kx = jax.random.split(key)

    # small shapes: batch=2, nc=4, ndf=8, isize=(16, 64) so the pre-final
    # feature map is (4, 16), matching the (4, 16) final conv kernel.
    N, nc, ndf, nz = 2, 4, 8, 16
    isize = (16, 64)

    params = init_dcgan_d_params(kp, isize, nz, nc, ndf, n_extra_layers=0)
    x = jax.random.normal(kx, (N, nc, isize[0], isize[1]), jnp.float32)

    out = jax.block_until_ready(dcgan_d_forward(params, x))
    ref = jax.block_until_ready(reference_forward(params, x))

    assert out.shape == (1,)
    if not jnp.allclose(out, ref, rtol=5e-3, atol=1e-3):
        raise SystemExit(f"MISMATCH: pallas={out} ref={ref}")
    print("KERNEL_OK")
</pallas_src>

<mosaic_0001>
module attributes {stable_mosaic.version = 11 : i64} {
  func.func @_conv_leaky_kernel(%arg0: i32, %arg1: memref<512x64xbf16, #tpu.memory_space<vmem>>, %arg2: memref<64x128xbf16, #tpu.memory_space<vmem>>, %arg3: memref<512x128xbf16, #tpu.memory_space<vmem>>) attributes {dimension_semantics = [#tpu.dimension_semantics<parallel>], iteration_bounds = array<i64: 1>, scalar_prefetch = 0 : i64, scratch_operands = 0 : i64, tpu.core_type = #tpu.core_type<tc>, window_params = [{transform_indices = @transform_0, window_bounds = array<i64: 512, 64>}, {pipeline_mode = #tpu.pipeline_mode<synchronous>, transform_indices = @transform_1, window_bounds = array<i64: 64, 128>}, {transform_indices = @transform_2, window_bounds = array<i64: 512, 128>}]} {
    %c0 = arith.constant 0 : index
    %c0_0 = arith.constant 0 : index
    %0 = vector.load %arg1[%c0, %c0_0] : memref<512x64xbf16, #tpu.memory_space<vmem>>, vector<512x64xbf16>
    %c0_1 = arith.constant 0 : index
    %c0_2 = arith.constant 0 : index
    %1 = vector.load %arg2[%c0_1, %c0_2] : memref<64x128xbf16, #tpu.memory_space<vmem>>, vector<64x128xbf16>
    %cst = arith.constant dense<0.000000e+00> : vector<512x128xf32>
    %2 = tpu.matmul %0, %1, %cst {dimension_numbers = #tpu.dot_dimension_numbers<[1], [0], [0], [1], [0, 0, 1, 1], [], []>} : vector<512x64xbf16>, vector<64x128xbf16>, vector<512x128xf32> -> vector<512x128xf32>
    %cst_3 = arith.constant 0.000000e+00 : f32
    %3 = vector.broadcast %cst_3 : f32 to vector<512x128xf32>
    %4 = arith.cmpf ogt, %2, %3 : vector<512x128xf32>
    %cst_4 = arith.constant 2.000000e-01 : f32
    %5 = vector.broadcast %cst_4 : f32 to vector<512x128xf32>
    %6 = arith.mulf %5, %2 : vector<512x128xf32>
    %7 = arith.select %4, %2, %6 : vector<512x128xi1>, vector<512x128xf32>
    %8 = arith.truncf %7 : vector<512x128xf32> to vector<512x128xbf16>
    %c0_5 = arith.constant 0 : index
    %c0_6 = arith.constant 0 : index
    %9 = vector.load %arg3[%c0_5, %c0_6] : memref<512x128xbf16, #tpu.memory_space<vmem>>, vector<512x128xbf16>
    tpu.vector_store %arg3[%c0_5, %c0_6], %8 {strides = array<i32>} : memref<512x128xbf16, #tpu.memory_space<vmem>>, vector<512x128xbf16>,
    return
  }
  func.func @transform_0(%arg0: i32) -> (i32, i32) {
    %c0_i32 = arith.constant 0 : i32
    %c0_i32_0 = arith.constant 0 : i32
    return %arg0, %c0_i32 : i32, i32
  }
  func.func @transform_1(%arg0: i32) -> (i32, i32) {
    %c0_i32 = arith.constant 0 : i32
    %c0_i32_0 = arith.constant 0 : i32
    %c0_i32_1 = arith.constant 0 : i32
    return %c0_i32, %c0_i32_0 : i32, i32
  }
  func.func @transform_2(%arg0: i32) -> (i32, i32) {
    %c0_i32 = arith.constant 0 : i32
    %c0_i32_0 = arith.constant 0 : i32
    return %arg0, %c0_i32 : i32, i32
  }
}

</mosaic_0001>

<bundles_post_ra>
// kernel: tpu_custom_call.1
= control target key start
LH: loop header
LB: loop body
LE: loop exit
PB: predicated region body
PF: predicated region fallthrough
CT: control target
= control target key end

     0   :  { %s1478_s0 = inlined_call_operand.vmem [shape: bf16[512,64], index: 0, kind: input, shape index: {}]   ;;  %s1479_s1 = inlined_call_operand.vmem [shape: bf16[64,128], index: 1, kind: input, shape index: {}]   ;;  %s1480_s2 = inlined_call_operand.hbm [shape: bf16[512,128], index: 2, kind: output, shape index: {}]  }
   0x1   :  { %v1084_v0 = vld [vmem:[%s1479_s1 + $0x18] sm:$0xff]  ;;  %v1083_v1 = vld [vmem:[%s1479_s1 + $0x10] sm:$0xff] }
   0x2   :  { %370 = vmatpush.bf16.msra.mxu0 %v1084_v0  ;;  %1276 = vmatpush.bf16.msra.mxu1 %v1084_v0 }
   0x3   :  { %1277 = vmatpush.bf16.msra.mxu2 %v1084_v0  ;;  %1278 = vmatpush.bf16.msra.mxu3 %v1084_v0 }
   0x4   :  { %7 = vsyncpa [#allocation3], 0  ;;  %v1082_v2 = vld [vmem:[%s1479_s1 + $0x8] sm:$0xff]  ;;  %v1081_v3 = vld [vmem:[%s1479_s1] sm:$0xff]  ;;  %vm269_vm0 = vcmask 523264   ;;  %s861_s25 = sshll.u32 %s1480_s2, 4  ;;  %s862_s25 = int_to_ptr.hbm [resolvable:$true] %s861_s25 }
   0x5   :  { %v1049_v4 = vld [vmem:[%s1478_s0] sm:$0xff]  ;;  %v1050_v8 = vld [vmem:[%s1478_s0 + $0x8] sm:$0xff]  ;;  %v1051_v12 = vld [vmem:[%s1478_s0 + $0x10] sm:$0xff]  ;;  %s1318_s26 = smov 64   ;;  %s1319_s27 = smov 4  }
   0x6   :  { %371 = vmatpush.bf16.msra.mxu0 %v1083_v1  ;;  %1279 = vmatpush.bf16.msra.mxu1 %v1083_v1  ;;  %v1057_v5 = vld [vmem:[%s1478_s0 + $0x40] sm:$0xff]  ;;  %v1058_v9 = vld [vmem:[%s1478_s0 + $0x48] sm:$0xff]  ;;  %v1059_v13 = vld [vmem:[%s1478_s0 + $0x50] sm:$0xff] }
   0x7   :  { %1280 = vmatpush.bf16.msra.mxu2 %v1083_v1  ;;  %1281 = vmatpush.bf16.msra.mxu3 %v1083_v1  ;;  %v1065_v6 = vld [vmem:[%s1478_s0 + $0x80] sm:$0xff]  ;;  %v1066_v10 = vld [vmem:[%s1478_s0 + $0x88] sm:$0xff]  ;;  %v1067_v14 = vld [vmem:[%s1478_s0 + $0x90] sm:$0xff] }
   0x8   :  { %v1073_v7 = vld [vmem:[%s1478_s0 + $0xc0] sm:$0xff]  ;;  %v1074_v11 = vld [vmem:[%s1478_s0 + $0xc8] sm:$0xff]  ;;  %v1075_v15 = vld [vmem:[%s1478_s0 + $0xd0] sm:$0xff] }
   0x9   :  { %v1052_v16 = vld [vmem:[%s1478_s0 + $0x18] sm:$0xff]  ;;  %v1053_v20 = vld [vmem:[%s1478_s0 + $0x20] sm:$0xff]  ;;  %v1054_v24 = vld [vmem:[%s1478_s0 + $0x28] sm:$0xff] }
   0xa   :  { %372 = vmatpush.bf16.msra.mxu0 %v1082_v2  ;;  %1282 = vmatpush.bf16.msra.mxu1 %v1082_v2  ;;  %v1060_v17 = vld [vmem:[%s1478_s0 + $0x58] sm:$0xff]  ;;  %v1061_v21 = vld [vmem:[%s1478_s0 + $0x60] sm:$0xff]  ;;  %v1062_v25 = vld [vmem:[%s1478_s0 + $0x68] sm:$0xff] }
   0xb   :  { %1283 = vmatpush.bf16.msra.mxu2 %v1082_v2  ;;  %1284 = vmatpush.bf16.msra.mxu3 %v1082_v2  ;;  %v1068_v18 = vld [vmem:[%s1478_s0 + $0x98] sm:$0xff]  ;;  %v1069_v22 = vld [vmem:[%s1478_s0 + $0xa0] sm:$0xff]  ;;  %v1070_v26 = vld [vmem:[%s1478_s0 + $0xa8] sm:$0xff] }
   0xc   :  { %v1076_v19 = vld [vmem:[%s1478_s0 + $0xd8] sm:$0xff]  ;;  %v1077_v23 = vld [vmem:[%s1478_s0 + $0xe0] sm:$0xff]  ;;  %v1078_v27 = vld [vmem:[%s1478_s0 + $0xe8] sm:$0xff] }
   0xd   :  { %v1055_v28 = vld [vmem:[%s1478_s0 + $0x30] sm:$0xff]  ;;  %v1056_v32 = vld [vmem:[%s1478_s0 + $0x38] sm:$0xff] }
   0xe   :  { %373 = vmatpush.bf16.msra.mxu0 %v1081_v3  ;;  %1285 = vmatpush.bf16.msra.mxu1 %v1081_v3  ;;  %v1063_v29 = vld [vmem:[%s1478_s0 + $0x70] sm:$0xff]  ;;  %v1064_v33 = vld [vmem:[%s1478_s0 + $0x78] sm:$0xff] }
   0xf   :  { %1286 = vmatpush.bf16.msra.mxu2 %v1081_v3  ;;  %1287 = vmatpush.bf16.msra.mxu3 %v1081_v3  ;;  %v1071_v30 = vld [vmem:[%s1478_s0 + $0xb0] sm:$0xff]  ;;  %v1072_v34 = vld [vmem:[%s1478_s0 + $0xb8] sm:$0xff] }
  0x10   :  { %v1079_v31 = vld [vmem:[%s1478_s0 + $0xf0] sm:$0xff]  ;;  %v1080_v35 = vld [vmem:[%s1478_s0 + $0xf8] sm:$0xff]  ;;  %s1317_s0 = smov [#allocation2]  }
  0x11   :  { %1017 = vmatmul.msk.bf16.vlgmr.msra.gmra.mxu0 %vm269_vm0, %v1049_v4  ;;  %1025 = vmatmul.msk.bf16.vlgmr.msra.gmra.mxu1 %vm269_vm0, %v1057_v5  ;;  %s859_s23 = sshll.u32 %s1317_s0, 4  ;;  %s860_s23 = int_to_ptr.vmem [resolvable:$true] %s859_s23 }
  0x12   :  { %1033 = vmatmul.msk.bf16.vlgmr.msra.gmra.mxu2 %vm269_vm0, %v1065_v6  ;;  %1041 = vmatmul.msk.bf16.vlgmr.msra.gmra.mxu3 %vm269_vm0, %v1073_v7 }
  0x21   :  { %1018 = vmatmul.msk.bf16.gmra.mxu0 %vm269_vm0, %v1050_v8  ;;  %1026 = vmatmul.msk.bf16.gmra.mxu1 %vm269_vm0, %v1058_v9 }
  0x22   :  { %1034 = vmatmul.msk.bf16.gmra.mxu2 %vm269_vm0, %v1066_v10  ;;  %1042 = vmatmul.msk.bf16.gmra.mxu3 %vm269_vm0, %v1074_v11 }
  0x31   :  { %1019 = vmatmul.msk.bf16.gmra.mxu0 %vm269_vm0, %v1051_v12  ;;  %1027 = vmatmul.msk.bf16.gmra.mxu1 %vm269_vm0, %v1059_v13 }
  0x32   :  { %1035 = vmatmul.msk.bf16.gmra.mxu2 %vm269_vm0, %v1067_v14  ;;  %1043 = vmatmul.msk.bf16.gmra.mxu3 %vm269_vm0, %v1075_v15 }
  0x41   :  { %1020 = vmatmul.msk.bf16.gmra.mxu0 %vm269_vm0, %v1052_v16  ;;  %1028 = vmatmul.msk.bf16.gmra.mxu1 %vm269_vm0, %v1060_v17 }
  0x42   :  { %1036 = vmatmul.msk.bf16.gmra.mxu2 %vm269_vm0, %v1068_v18  ;;  %1044 = vmatmul.msk.bf16.gmra.mxu3 %vm269_vm0, %v1076_v19 }
  0x51   :  { %1021 = vmatmul.msk.bf16.gmra.mxu0 %vm269_vm0, %v1053_v20  ;;  %1029 = vmatmul.msk.bf16.gmra.mxu1 %vm269_vm0, %v1061_v21 }
  0x52   :  { %1037 = vmatmul.msk.bf16.gmra.mxu2 %vm269_vm0, %v1069_v22  ;;  %1045 = vmatmul.msk.bf16.gmra.mxu3 %vm269_vm0, %v1077_v23 }
  0x61   :  { %1022 = vmatmul.msk.bf16.gmra.mxu0 %vm269_vm0, %v1054_v24  ;;  %1030 = vmatmul.msk.bf16.gmra.mxu1 %vm269_vm0, %v1062_v25 }
  0x62   :  { %1038 = vmatmul.msk.bf16.gmra.mxu2 %vm269_vm0, %v1070_v26  ;;  %1046 = vmatmul.msk.bf16.gmra.mxu3 %vm269_vm0, %v1078_v27 }
  0x71   :  { %1023 = vmatmul.msk.bf16.gmra.mxu0 %vm269_vm0, %v1055_v28  ;;  %1031 = vmatmul.msk.bf16.gmra.mxu1 %vm269_vm0, %v1063_v29 }
  0x72   :  { %1039 = vmatmul.msk.bf16.gmra.mxu2 %vm269_vm0, %v1071_v30  ;;  %1047 = vmatmul.msk.bf16.gmra.mxu3 %vm269_vm0, %v1079_v31 }
  0x81   :  { %1024 = vmatmul.msk.bf16.gmra.mxu0 %vm269_vm0, %v1056_v32  ;;  %1032 = vmatmul.msk.bf16.gmra.mxu1 %vm269_vm0, %v1064_v33 }
  0x82   :  { %1040 = vmatmul.msk.bf16.gmra.mxu2 %vm269_vm0, %v1072_v34  ;;  %1048 = vmatmul.msk.bf16.gmra.mxu3 %vm269_vm0, %v1080_v35 }
  0x8e   :  { %v375_v36 = vpop.f32.mrf.mxu0  ;;  %v415_v37 = vpop.f32.mrf.mxu1 }
  0x8f   :  { %v599_v38 = vmul.f32 0.2, %v375_v36  ;;  %v615_v39 = vmul.f32 0.2, %v415_v37  ;;  %vm535_vm1 = vcmp.gt.f32.partialorder %v375_v36, 0.0  ;;  %vm551_vm2 = vcmp.gt.f32.partialorder %v415_v37, 0.0 }
  0x91   :  { %v663_v46 = vsel %vm535_vm1, %v375_v36, %v599_v38  ;;  %v679_v47 = vsel %vm551_vm2, %v415_v37, %v615_v39 }
  0x95   :  { %v455_v40 = vpop.f32.mrf.mxu2  ;;  %v495_v41 = vpop.f32.mrf.mxu3 }
  0x96   :  { %v377_v42 = vpop.f32.mrf.mxu0  ;;  %v417_v43 = vpop.f32.mrf.mxu1  ;;  %v631_v52 = vmul.f32 0.2, %v455_v40  ;;  %v647_v53 = vmul.f32 0.2, %v495_v41  ;;  %vm567_vm5 = vcmp.gt.f32.partialorder %v455_v40, 0.0  ;;  %vm583_vm6 = vcmp.gt.f32.partialorder %v495_v41, 0.0 }
  0x97   :  { %vm536_vm3 = vcmp.gt.f32.partialorder %v377_v42, 0.0  ;;  %v600_v44 = vmul.f32 0.2, %v377_v42  ;;  %vm552_vm4 = vcmp.gt.f32.partialorder %v417_v43, 0.0  ;;  %v616_v45 = vmul.f32 0.2, %v417_v43 }
  0x98   :  { %v695_v60 = vsel %vm567_vm5, %v455_v40, %v631_v52  ;;  %v711_v61 = vsel %vm583_vm6, %v495_v41, %v647_v53 }
  0x99   :  { %v664_v48 = vsel %vm536_vm3, %v377_v42, %v600_v44  ;;  %v680_v49 = vsel %vm552_vm4, %v417_v43, %v616_v45 }
  0x9a   :  { %v1088_v50 = vpack.c.bf16 %v664_v48, %v663_v46  ;;  %v1128_v51 = vpack.c.bf16 %v680_v49, %v679_v47 }
  0x9c   :  { %1089 = vst [vmem:[#allocation2] sm:$0xff] %v1088_v50  }
  0x9d   :  { %1252 = vst [vmem:[#allocation2 + $0x40] sm:$0xff] %v1128_v51   ;;  %v457_v54 = vpop.f32.mrf.mxu2  ;;  %v497_v55 = vpop.f32.mrf.mxu3 }
  0x9e   :  { %vm568_vm7 = vcmp.gt.f32.partialorder %v457_v54, 0.0  ;;  %v632_v56 = vmul.f32 0.2, %v457_v54  ;;  %vm584_vm8 = vcmp.gt.f32.partialorder %v497_v55, 0.0  ;;  %v648_v57 = vmul.f32 0.2, %v497_v55  ;;  %v380_v58 = vpop.f32.mrf.mxu0  ;;  %v420_v59 = vpop.f32.mrf.mxu1 }
  0x9f   :  { %v601_v2 = vmul.f32 0.2, %v380_v58  ;;  %v617_v3 = vmul.f32 0.2, %v420_v59  ;;  %vm537_vm9 = vcmp.gt.f32.partialorder %v380_v58, 0.0  ;;  %vm553_vm10 = vcmp.gt.f32.partialorder %v420_v59, 0.0 }
  0xa0   :  { %v696_v62 = vsel %vm568_vm7, %v457_v54, %v632_v56  ;;  %v712_v63 = vsel %vm584_vm8, %v497_v55, %v648_v57 }
  0xa1   :  { %v1168_v0 = vpack.c.bf16 %v696_v62, %v695_v60  ;;  %v1208_v1 = vpack.c.bf16 %v712_v63, %v711_v61  ;;  %v665_v10 = vsel %vm537_vm9, %v380_v58, %v601_v2  ;;  %v681_v11 = vsel %vm553_vm10, %v420_v59, %v617_v3 }
  0xa3   :  { %1260 = vst [vmem:[#allocation2 + $0x80] sm:$0xff] %v1168_v0  }
  0xa4   :  { %1268 = vst [vmem:[#allocation2 + $0xc0] sm:$0xff] %v1208_v1  }
  0xa5   :  { %v460_v4 = vpop.f32.mrf.mxu2  ;;  %v500_v5 = vpop.f32.mrf.mxu3 }
  0xa6   :  { %v382_v6 = vpop.f32.mrf.mxu0  ;;  %v422_v7 = vpop.f32.mrf.mxu1  ;;  %v633_v16 = vmul.f32 0.2, %v460_v4  ;;  %v649_v17 = vmul.f32 0.2, %v500_v5  ;;  %vm569_vm13 = vcmp.gt.f32.partialorder %v460_v4, 0.0  ;;  %vm585_vm14 = vcmp.gt.f32.partialorder %v500_v5, 0.0 }
  0xa7   :  { %vm538_vm11 = vcmp.gt.f32.partialorder %v382_v6, 0.0  ;;  %v602_v8 = vmul.f32 0.2, %v382_v6  ;;  %vm554_vm12 = vcmp.gt.f32.partialorder %v422_v7, 0.0  ;;  %v618_v9 = vmul.f32 0.2, %v422_v7 }
  0xa8   :  { %v697_v24 = vsel %vm569_vm13, %v460_v4, %v633_v16  ;;  %v713_v25 = vsel %vm585_vm14, %v500_v5, %v649_v17 }
  0xa9   :  { %v666_v12 = vsel %vm538_vm11, %v382_v6, %v602_v8  ;;  %v682_v13 = vsel %vm554_vm12, %v422_v7, %v618_v9 }
  0xaa   :  { %v1093_v14 = vpack.c.bf16 %v666_v12, %v665_v10  ;;  %v1133_v15 = vpack.c.bf16 %v682_v13, %v681_v11 }
  0xac   :  { %1245 = vst [vmem:[#allocation2 + $0x8] sm:$0xff] %v1093_v14  }
  0xad   :  { %1253 = vst [vmem:[#allocation2 + $0x48] sm:$0xff] %v1133_v15   ;;  %v462_v18 = vpop.f32.mrf.mxu2  ;;  %v502_v19 = vpop.f32.mrf.mxu3 }
  0xae   :  { %vm570_vm15 = vcmp.gt.f32.partialorder %v462_v18, 0.0  ;;  %v634_v20 = vmul.f32 0.2, %v462_v18  ;;  %vm586_vm0 = vcmp.gt.f32.partialorder %v502_v19, 0.0  ;;  %v650_v21 = vmul.f32 0.2, %v502_v19  ;;  %v385_v22 = vpop.f32.mrf.mxu0  ;;  %v425_v23 = vpop.f32.mrf.mxu1 }
  0xaf   :  { %v603_v30 = vmul.f32 0.2, %v385_v22  ;;  %v619_v31 = vmul.f32 0.2, %v425_v23  ;;  %vm539_vm1 = vcmp.gt.f32.partialorder %v385_v22, 0.0  ;;  %vm555_vm2 = vcmp.gt.f32.partialorder %v425_v23, 0.0 }
  0xb0   :  { %v698_v26 = vsel %vm570_vm15, %v462_v18, %v634_v20  ;;  %v714_v27 = vsel %vm586_vm0, %v502_v19, %v650_v21 }
  0xb1   :  { %v1173_v28 = vpack.c.bf16 %v698_v26, %v697_v24  ;;  %v1213_v29 = vpack.c.bf16 %v714_v27, %v713_v25  ;;  %v667_v38 = vsel %vm539_vm1, %v385_v22, %v603_v30  ;;  %v683_v39 = vsel %vm555_vm2, %v425_v23, %v619_v31 }
  0xb3   :  { %1261 = vst [vmem:[#allocation2 + $0x88] sm:$0xff] %v1173_v28  }
  0xb4   :  { %1269 = vst [vmem:[#allocation2 + $0xc8] sm:$0xff] %v1213_v29  }
  0xb5   :  { %v465_v32 = vpop.f32.mrf.mxu2  ;;  %v505_v33 = vpop.f32.mrf.mxu3 }
  0xb6   :  { %v387_v34 = vpop.f32.mrf.mxu0  ;;  %v427_v35 = vpop.f32.mrf.mxu1  ;;  %v635_v44 = vmul.f32 0.2, %v465_v32  ;;  %v651_v45 = vmul.f32 0.2, %v505_v33  ;;  %vm571_vm5 = vcmp.gt.f32.partialorder %v465_v32, 0.0  ;;  %vm587_vm6 = vcmp.gt.f32.partialorder %v505_v33, 0.0 }
  0xb7   :  { %vm540_vm3 = vcmp.gt.f32.partialorder %v387_v34, 0.0  ;;  %v604_v36 = vmul.f32 0.2, %v387_v34  ;;  %vm556_vm4 = vcmp.gt.f32.partialorder %v427_v35, 0.0  ;;  %v620_v37 = vmul.f32 0.2, %v427_v35 }
  0xb8   :  { %v699_v52 = vsel %vm571_vm5, %v465_v32, %v635_v44  ;;  %v715_v53 = vsel %vm587_vm6, %v505_v33, %v651_v45 }
  0xb9   :  { %v668_v40 = vsel %vm540_vm3, %v387_v34, %v604_v36  ;;  %v684_v41 = vsel %vm556_vm4, %v427_v35, %v620_v37 }
  0xba   :  { %v1098_v42 = vpack.c.bf16 %v668_v40, %v667_v38  ;;  %v1138_v43 = vpack.c.bf16 %v684_v41, %v683_v39 }
  0xbc   :  { %1246 = vst [vmem:[#allocation2 + $0x10] sm:$0xff] %v1098_v42  }
  0xbd   :  { %1254 = vst [vmem:[#allocation2 + $0x50] sm:$0xff] %v1138_v43   ;;  %v467_v46 = vpop.f32.mrf.mxu2  ;;  %v507_v47 = vpop.f32.mrf.mxu3 }
  0xbe   :  { %vm572_vm7 = vcmp.gt.f32.partialorder %v467_v46, 0.0  ;;  %v636_v48 = vmul.f32 0.2, %v467_v46  ;;  %vm588_vm8 = vcmp.gt.f32.partialorder %v507_v47, 0.0  ;;  %v652_v49 = vmul.f32 0.2, %v507_v47  ;;  %v390_v50 = vpop.f32.mrf.mxu0  ;;  %v430_v51 = vpop.f32.mrf.mxu1 }
  0xbf   :  { %v605_v58 = vmul.f32 0.2, %v390_v50  ;;  %v621_v59 = vmul.f32 0.2, %v430_v51  ;;  %vm541_vm9 = vcmp.gt.f32.partialorder %v390_v50, 0.0  ;;  %vm557_vm10 = vcmp.gt.f32.partialorder %v430_v51, 0.0 }
  0xc0   :  { %v700_v54 = vsel %vm572_vm7, %v467_v46, %v636_v48  ;;  %v716_v55 = vsel %vm588_vm8, %v507_v47, %v652_v49 }
  0xc1   :  { %v1178_v56 = vpack.c.bf16 %v700_v54, %v699_v52  ;;  %v1218_v57 = vpack.c.bf16 %v716_v55, %v715_v53  ;;  %v669_v2 = vsel %vm541_vm9, %v390_v50, %v605_v58  ;;  %v685_v3 = vsel %vm557_vm10, %v430_v51, %v621_v59 }
  0xc3   :  { %1262 = vst [vmem:[#allocation2 + $0x90] sm:$0xff] %v1178_v56  }
  0xc4   :  { %1270 = vst [vmem:[#allocation2 + $0xd0] sm:$0xff] %v1218_v57  }
  0xc5   :  { %v470_v60 = vpop.f32.mrf.mxu2  ;;  %v510_v61 = vpop.f32.mrf.mxu3 }
  0xc6   :  { %v392_v62 = vpop.f32.mrf.mxu0  ;;  %v432_v63 = vpop.f32.mrf.mxu1  ;;  %v637_v8 = vmul.f32 0.2, %v470_v60  ;;  %v653_v9 = vmul.f32 0.2, %v510_v61  ;;  %vm573_vm13 = vcmp.gt.f32.partialorder %v470_v60, 0.0  ;;  %vm589_vm14 = vcmp.gt.f32.partialorder %v510_v61, 0.0 }
  0xc7   :  { %vm542_vm11 = vcmp.gt.f32.partialorder %v392_v62, 0.0  ;;  %v606_v0 = vmul.f32 0.2, %v392_v62  ;;  %vm558_vm12 = vcmp.gt.f32.partialorder %v432_v63, 0.0  ;;  %v622_v1 = vmul.f32 0.2, %v432_v63 }
  0xc8   :  { %v701_v16 = vsel %vm573_vm13, %v470_v60, %v637_v8  ;;  %v717_v17 = vsel %vm589_vm14, %v510_v61, %v653_v9 }
  0xc9   :  { %v670_v4 = vsel %vm542_vm11, %v392_v62, %v606_v0  ;;  %v686_v5 = vsel %vm558_vm12, %v432_v63, %v622_v1 }
  0xca   :  { %v1103_v6 = vpack.c.bf16 %v670_v4, %v669_v2  ;;  %v1143_v7 = vpack.c.bf16 %v686_v5, %v685_v3 }
  0xcc   :  { %1247 = vst [vmem:[#allocation2 + $0x18] sm:$0xff] %v1103_v6  }
  0xcd   :  { %1255 = vst [vmem:[#allocation2 + $0x58] sm:$0xff] %v1143_v7   ;;  %v472_v10 = vpop.f32.mrf.mxu2  ;;  %v512_v11 = vpop.f32.mrf.mxu3 }
  0xce   :  { %vm574_vm15 = vcmp.gt.f32.partialorder %v472_v10, 0.0  ;;  %v638_v12 = vmul.f32 0.2, %v472_v10  ;;  %vm590_vm0 = vcmp.gt.f32.partialorder %v512_v11, 0.0  ;;  %v654_v13 = vmul.f32 0.2, %v512_v11  ;;  %v395_v14 = vpop.f32.mrf.mxu0  ;;  %v435_v15 = vpop.f32.mrf.mxu1 }
  0xcf   :  { %v607_v22 = vmul.f32 0.2, %v395_v14  ;;  %v623_v23 = vmul.f32 0.2, %v435_v15  ;;  %vm543_vm1 = vcmp.gt.f32.partialorder %v395_v14, 0.0  ;;  %vm559_vm2 = vcmp.gt.f32.partialorder %v435_v15, 0.0 }
  0xd0   :  { %v702_v18 = vsel %vm574_vm15, %v472_v10, %v638_v12  ;;  %v718_v19 = vsel %vm590_vm0, %v512_v11, %v654_v13 }
  0xd1   :  { %v1183_v20 = vpack.c.bf16 %v702_v18, %v701_v16  ;;  %v1223_v21 = vpack.c.bf16 %v718_v19, %v717_v17  ;;  %v671_v30 = vsel %vm543_vm1, %v395_v14, %v607_v22  ;;  %v687_v31 = vsel %vm559_vm2, %v435_v15, %v623_v23 }
  0xd3   :  { %1263 = vst [vmem:[#allocation2 + $0x98] sm:$0xff] %v1183_v20  }
  0xd4   :  { %1271 = vst [vmem:[#allocation2 + $0xd8] sm:$0xff] %v1223_v21  }
  0xd5   :  { %v475_v24 = vpop.f32.mrf.mxu2  ;;  %v515_v25 = vpop.f32.mrf.mxu3 }
  0xd6   :  { %v397_v26 = vpop.f32.mrf.mxu0  ;;  %v437_v27 = vpop.f32.mrf.mxu1  ;;  %v639_v36 = vmul.f32 0.2, %v475_v24  ;;  %v655_v37 = vmul.f32 0.2, %v515_v25  ;;  %vm575_vm5 = vcmp.gt.f32.partialorder %v475_v24, 0.0  ;;  %vm591_vm6 = vcmp.gt.f32.partialorder %v515_v25, 0.0 }
  0xd7   :  { %vm544_vm3 = vcmp.gt.f32.partialorder %v397_v26, 0.0  ;;  %v608_v28 = vmul.f32 0.2, %v397_v26  ;;  %vm560_vm4 = vcmp.gt.f32.partialorder %v437_v27, 0.0  ;;  %v624_v29 = vmul.f32 0.2, %v437_v27 }
  0xd8   :  { %v703_v44 = vsel %vm575_vm5, %v475_v24, %v639_v36  ;;  %v719_v45 = vsel %vm591_vm6, %v515_v25, %v655_v37 }
  0xd9   :  { %v672_v32 = vsel %vm544_vm3, %v397_v26, %v608_v28  ;;  %v688_v33 = vsel %vm560_vm4, %v437_v27, %v624_v29 }
  0xda   :  { %v1108_v34 = vpack.c.bf16 %v672_v32, %v671_v30  ;;  %v1148_v35 = vpack.c.bf16 %v688_v33, %v687_v31 }
  0xdc   :  { %1248 = vst [vmem:[#allocation2 + $0x20] sm:$0xff] %v1108_v34  }
  0xdd   :  { %1256 = vst [vmem:[#allocation2 + $0x60] sm:$0xff] %v1148_v35   ;;  %v477_v38 = vpop.f32.mrf.mxu2  ;;  %v517_v39 = vpop.f32.mrf.mxu3 }
  0xde   :  { %vm576_vm7 = vcmp.gt.f32.partialorder %v477_v38, 0.0  ;;  %v640_v40 = vmul.f32 0.2, %v477_v38  ;;  %vm592_vm8 = vcmp.gt.f32.partialorder %v517_v39, 0.0  ;;  %v656_v41 = vmul.f32 0.2, %v517_v39  ;;  %v400_v42 = vpop.f32.mrf.mxu0  ;;  %v440_v43 = vpop.f32.mrf.mxu1 }
  0xdf   :  { %v609_v50 = vmul.f32 0.2, %v400_v42  ;;  %v625_v51 = vmul.f32 0.2, %v440_v43  ;;  %vm545_vm9 = vcmp.gt.f32.partialorder %v400_v42, 0.0  ;;  %vm561_vm10 = vcmp.gt.f32.partialorder %v440_v43, 0.0 }
  0xe0   :  { %v704_v46 = vsel %vm576_vm7, %v477_v38, %v640_v40  ;;  %v720_v47 = vsel %vm592_vm8, %v517_v39, %v656_v41 }
  0xe1   :  { %v1188_v48 = vpack.c.bf16 %v704_v46, %v703_v44  ;;  %v1228_v49 = vpack.c.bf16 %v720_v47, %v719_v45  ;;  %v673_v58 = vsel %vm545_vm9, %v400_v42, %v609_v50  ;;  %v689_v59 = vsel %vm561_vm10, %v440_v43, %v625_v51 }
  0xe3   :  { %1264 = vst [vmem:[#allocation2 + $0xa0] sm:$0xff] %v1188_v48  }
  0xe4   :  { %1272 = vst [vmem:[#allocation2 + $0xe0] sm:$0xff] %v1228_v49  }
  0xe5   :  { %v480_v52 = vpop.f32.mrf.mxu2  ;;  %v520_v53 = vpop.f32.mrf.mxu3 }
  0xe6   :  { %v402_v54 = vpop.f32.mrf.mxu0  ;;  %v442_v55 = vpop.f32.mrf.mxu1  ;;  %v641_v0 = vmul.f32 0.2, %v480_v52  ;;  %v657_v1 = vmul.f32 0.2, %v520_v53  ;;  %vm577_vm13 = vcmp.gt.f32.partialorder %v480_v52, 0.0  ;;  %vm593_vm14 = vcmp.gt.f32.partialorder %v520_v53, 0.0 }
  0xe7   :  { %vm546_vm11 = vcmp.gt.f32.partialorder %v402_v54, 0.0  ;;  %v610_v56 = vmul.f32 0.2, %v402_v54  ;;  %vm562_vm12 = vcmp.gt.f32.partialorder %v442_v55, 0.0  ;;  %v626_v57 = vmul.f32 0.2, %v442_v55 }
  0xe8   :  { %v705_v8 = vsel %vm577_vm13, %v480_v52, %v641_v0  ;;  %v721_v9 = vsel %vm593_vm14, %v520_v53, %v657_v1 }
  0xe9   :  { %v674_v60 = vsel %vm546_vm11, %v402_v54, %v610_v56  ;;  %v690_v61 = vsel %vm562_vm12, %v442_v55, %v626_v57 }
  0xea   :  { %v1113_v62 = vpack.c.bf16 %v674_v60, %v673_v58  ;;  %v1153_v63 = vpack.c.bf16 %v690_v61, %v689_v59 }
  0xec   :  { %1249 = vst [vmem:[#allocation2 + $0x28] sm:$0xff] %v1113_v62  }
  0xed   :  { %1257 = vst [vmem:[#allocation2 + $0x68] sm:$0xff] %v1153_v63   ;;  %v482_v2 = vpop.f32.mrf.mxu2  ;;  %v522_v3 = vpop.f32.mrf.mxu3 }
  0xee   :  { %vm578_vm15 = vcmp.gt.f32.partialorder %v482_v2, 0.0  ;;  %v642_v4 = vmul.f32 0.2, %v482_v2  ;;  %vm594_vm0 = vcmp.gt.f32.partialorder %v522_v3, 0.0  ;;  %v658_v5 = vmul.f32 0.2, %v522_v3  ;;  %v405_v6 = vpop.f32.mrf.mxu0  ;;  %v445_v7 = vpop.f32.mrf.mxu1 }
  0xef   :  { %v611_v14 = vmul.f32 0.2, %v405_v6  ;;  %v627_v15 = vmul.f32 0.2, %v445_v7  ;;  %vm547_vm1 = vcmp.gt.f32.partialorder %v405_v6, 0.0  ;;  %vm563_vm2 = vcmp.gt.f32.partialorder %v445_v7, 0.0 }
  0xf0   :  { %v706_v10 = vsel %vm578_vm15, %v482_v2, %v642_v4  ;;  %v722_v11 = vsel %vm594_vm0, %v522_v3, %v658_v5 }
  0xf1   :  { %v1193_v12 = vpack.c.bf16 %v706_v10, %v705_v8  ;;  %v1233_v13 = vpack.c.bf16 %v722_v11, %v721_v9  ;;  %v675_v22 = vsel %vm547_vm1, %v405_v6, %v611_v14  ;;  %v691_v23 = vsel %vm563_vm2, %v445_v7, %v627_v15 }
  0xf3   :  { %1265 = vst [vmem:[#allocation2 + $0xa8] sm:$0xff] %v1193_v12  }
  0xf4   :  { %1273 = vst [vmem:[#allocation2 + $0xe8] sm:$0xff] %v1233_v13  }
  0xf5   :  { %v485_v16 = vpop.f32.mrf.mxu2  ;;  %v525_v17 = vpop.f32.mrf.mxu3 }
  0xf6   :  { %v407_v18 = vpop.f32.mrf.mxu0  ;;  %v447_v19 = vpop.f32.mrf.mxu1  ;;  %v643_v28 = vmul.f32 0.2, %v485_v16  ;;  %v659_v29 = vmul.f32 0.2, %v525_v17  ;;  %vm579_vm5 = vcmp.gt.f32.partialorder %v485_v16, 0.0  ;;  %vm595_vm6 = vcmp.gt.f32.partialorder %v525_v17, 0.0 }
  0xf7   :  { %vm548_vm3 = vcmp.gt.f32.partialorder %v407_v18, 0.0  ;;  %v612_v20 = vmul.f32 0.2, %v407_v18  ;;  %vm564_vm4 = vcmp.gt.f32.partialorder %v447_v19, 0.0  ;;  %v628_v21 = vmul.f32 0.2, %v447_v19 }
  0xf8   :  { %v707_v36 = vsel %vm579_vm5, %v485_v16, %v643_v28  ;;  %v723_v37 = vsel %vm595_vm6, %v525_v17, %v659_v29 }
  0xf9   :  { %v676_v24 = vsel %vm548_vm3, %v407_v18, %v612_v20  ;;  %v692_v25 = vsel %vm564_vm4, %v447_v19, %v628_v21 }
  0xfa   :  { %v1118_v26 = vpack.c.bf16 %v676_v24, %v675_v22  ;;  %v1158_v27 = vpack.c.bf16 %v692_v25, %v691_v23 }
  0xfc   :  { %1250 = vst [vmem:[#allocation2 + $0x30] sm:$0xff] %v1118_v26  }
  0xfd   :  { %1258 = vst [vmem:[#allocation2 + $0x70] sm:$0xff] %v1158_v27   ;;  %v487_v30 = vpop.f32.mrf.mxu2  ;;  %v527_v31 = vpop.f32.mrf.mxu3 }
  0xfe   :  { %vm580_vm7 = vcmp.gt.f32.partialorder %v487_v30, 0.0  ;;  %v644_v32 = vmul.f32 0.2, %v487_v30  ;;  %vm596_vm8 = vcmp.gt.f32.partialorder %v527_v31, 0.0  ;;  %v660_v33 = vmul.f32 0.2, %v527_v31  ;;  %v410_v34 = vpop.f32.mrf.mxu0  ;;  %v450_v35 = vpop.f32.mrf.mxu1 }
  0xff   :  { %v613_v42 = vmul.f32 0.2, %v410_v34  ;;  %v629_v43 = vmul.f32 0.2, %v450_v35  ;;  %vm549_vm9 = vcmp.gt.f32.partialorder %v410_v34, 0.0  ;;  %vm565_vm10 = vcmp.gt.f32.partialorder %v450_v35, 0.0 }
 0x100   :  { %v708_v38 = vsel %vm580_vm7, %v487_v30, %v644_v32  ;;  %v724_v39 = vsel %vm596_vm8, %v527_v31, %v660_v33 }
 0x101   :  { %v1198_v40 = vpack.c.bf16 %v708_v38, %v707_v36  ;;  %v1238_v41 = vpack.c.bf16 %v724_v39, %v723_v37  ;;  %v677_v50 = vsel %vm549_vm9, %v410_v34, %v613_v42  ;;  %v693_v51 = vsel %vm565_vm10, %v450_v35, %v629_v43 }
 0x103   :  { %1266 = vst [vmem:[#allocation2 + $0xb0] sm:$0xff] %v1198_v40  }
 0x104   :  { %1274 = vst [vmem:[#allocation2 + $0xf0] sm:$0xff] %v1238_v41  }
 0x105   :  { %v490_v44 = vpop.f32.mrf.mxu2  ;;  %v530_v45 = vpop.f32.mrf.mxu3 }
 0x106   :  { %v412_v46 = vpop.f32.mrf.mxu0  ;;  %v452_v47 = vpop.f32.mrf.mxu1  ;;  %v645_v56 = vmul.f32 0.2, %v490_v44  ;;  %v661_v57 = vmul.f32 0.2, %v530_v45  ;;  %vm581_vm13 = vcmp.gt.f32.partialorder %v490_v44, 0.0  ;;  %vm597_vm14 = vcmp.gt.f32.partialorder %v530_v45, 0.0 }
 0x107   :  { %vm550_vm11 = vcmp.gt.f32.partialorder %v412_v46, 0.0  ;;  %v614_v48 = vmul.f32 0.2, %v412_v46  ;;  %vm566_vm12 = vcmp.gt.f32.partialorder %v452_v47, 0.0  ;;  %v630_v49 = vmul.f32 0.2, %v452_v47 }
 0x108   :  { %v709_v62 = vsel %vm581_vm13, %v490_v44, %v645_v56  ;;  %v725_v63 = vsel %vm597_vm14, %v530_v45, %v661_v57 }
 0x109   :  { %v678_v52 = vsel %vm550_vm11, %v412_v46, %v614_v48  ;;  %v694_v53 = vsel %vm566_vm12, %v452_v47, %v630_v49 }
 0x10a   :  { %v1123_v54 = vpack.c.bf16 %v678_v52, %v677_v50  ;;  %v1163_v55 = vpack.c.bf16 %v694_v53, %v693_v51 }
 0x10c   :  { %1251 = vst [vmem:[#allocation2 + $0x38] sm:$0xff] %v1123_v54  }
 0x10d   :  { %1259 = vst [vmem:[#allocation2 + $0x78] sm:$0xff] %v1163_v55   ;;  %v492_v58 = vpop.f32.mrf.mxu2  ;;  %v532_v59 = vpop.f32.mrf.mxu3 }
 0x10e   :  { %vm582_vm15 = vcmp.gt.f32.partialorder %v492_v58, 0.0  ;;  %v646_v60 = vmul.f32 0.2, %v492_v58  ;;  %vm598_vm0 = vcmp.gt.f32.partialorder %v532_v59, 0.0  ;;  %v662_v61 = vmul.f32 0.2, %v532_v59 }
 0x110   :  { %v710_v0 = vsel %vm582_vm15, %v492_v58, %v646_v60  ;;  %v726_v1 = vsel %vm598_vm0, %v532_v59, %v662_v61 }
 0x111   :  { %v1203_v2 = vpack.c.bf16 %v710_v0, %v709_v62  ;;  %v1243_v3 = vpack.c.bf16 %v726_v1, %v725_v63 }
 0x113   :  { %1267 = vst [vmem:[#allocation2 + $0xb8] sm:$0xff] %v1203_v2  }
 0x114   :  { %1275 = vst [vmem:[#allocation2 + $0xf8] sm:$0xff] %v1243_v3  }
 0x115   :  { %867 = dma.vmem_to_hbm [thread:$0]  %s860_s23, 4096, %s862_s25, [#allocation3], %s1318_s26, %s1318_s26, %s1319_s27  }
 0x116   :  { %1315 = dma.done.wait [#allocation3], 4096  }
 0x117   :  { %1316 = vsyncadd [#allocation3], 4294963200 }
 0x118   :  { %872 = vsyncpa [#allocation3], 1 }

</bundles_post_ra>
